<compile_context>
chip_gen: v7x
topology: tpu7x:2x2x1
jax: 0.10.0
libtpu: 0.0.40
codegen_flags: <defaults>
</compile_context>

<pallas_src>
import jax
import jax.numpy as jnp
from jax.experimental import pallas as pl
from jax.experimental.pallas import tpu as pltpu

NEG_SLOPE = 0.01  # nn.LeakyReLU default (CreateMLP's default activation)


def _round_up(v, m):
    return ((v + m - 1) // m) * m


def _leaky_relu(v):
    return jnp.where(v > 0, v, NEG_SLOPE * v)


# ---------------- fused Pallas kernel ----------------

def _node_model_kernel(
    row_ref,    # (E_pad, 1)  int32  source node per edge (x[row] gather)
    colT_ref,   # (1, E_pad)  int32  destination node per edge (scatter target)
    x_ref,      # (N_pad, XF) f32
    ea_ref,     # (E_pad, EF) f32
    w1x_ref, w1e_ref, b1a_ref,   # node_mlp_1 layer 0 (split:  x-rows / edge-rows), bias
    w1b_ref, b1b_ref,            # node_mlp_1 layer 1
    w2x_ref, w2g_ref, b2a_ref,   # node_mlp_2 layer 0 (split:  x-rows / agg-rows), bias
    w2b_ref, b2b_ref,            # node_mlp_2 layer 1 (output cols lane-padded to 128)
    o_ref,                       # (N_pad, O_lanes) f32
):
    bf = jnp.bfloat16
    E_pad = row_ref.shape[0]
    N_pad = x_ref.shape[0]

    x = x_ref[...]
    ea = ea_ref[...]

    # ---- gather x[row]: one-hot (E,N) mask built from iota, matmul on MXU ----
    node_iota_e = jax.lax.broadcasted_iota(jnp.int32, (E_pad, N_pad), 1)
    g_row = (node_iota_e == row_ref[...]).astype(jnp.float32)          # (E_pad, N_pad)
    x_row = jnp.dot(g_row, x, preferred_element_type=jnp.float32)      # (E_pad, XF)

    # ---- node_mlp_1 on cat([x[row], edge_attr]) via split weights (no concat) ----
    h1 = (jnp.dot(x_row.astype(bf), w1x_ref[...].astype(bf),
                  preferred_element_type=jnp.float32)
          + jnp.dot(ea.astype(bf), w1e_ref[...].astype(bf),
                    preferred_element_type=jnp.float32)
          + b1a_ref[...])
    h1 = _leaky_relu(h1)
    msg = (jnp.dot(h1.astype(bf), w1b_ref[...].astype(bf),
                   preferred_element_type=jnp.float32)
           + b1b_ref[...])                                             # (E_pad, O)

    # ---- scatter_mean(msg, col): sum via one-hot^T matmul, then * 1/count (EUP) ----
    node_iota_n = jax.lax.broadcasted_iota(jnp.int32, (N_pad, E_pad), 0)
    s_colT = (node_iota_n == colT_ref[...]).astype(jnp.float32)        # (N_pad, E_pad)
    summed = jnp.dot(s_colT, msg, preferred_element_type=jnp.float32)  # (N_pad, O)
    counts = jnp.sum(s_colT, axis=1, keepdims=True)                    # (N_pad, 1)
    inv = pl.reciprocal(jnp.maximum(counts, 1.0), approx=True)
    agg = summed * inv                                                 # scatter_mean

    # ---- node_mlp_2 on cat([x, agg]) via split weights ----
    h2 = (jnp.dot(x.astype(bf), w2x_ref[...].astype(bf),
                  preferred_element_type=jnp.float32)
          + jnp.dot(agg.astype(bf), w2g_ref[...].astype(bf),
                    preferred_element_type=jnp.float32)
          + b2a_ref[...])
    h2 = _leaky_relu(h2)
    o_ref[...] = (jnp.dot(h2.astype(bf), w2b_ref[...].astype(bf),
                          preferred_element_type=jnp.float32)
                  + b2b_ref[...])                                      # lane-dense store


# ---------------- wrapper ----------------

def node_model_pallas(params, x, edge_index, edge_attr):
    """NodeModel.forward(x, edge_index, edge_attr, u=None, batch=None) — u/batch unused."""
    (w1a, b1a), (w1b, b1b) = params["mlp1"]   # node_mlp_1: (XF+EF,H),(H,), (H,O),(O,)
    (w2a, b2a), (w2b, b2b) = params["mlp2"]   # node_mlp_2: (XF+O,H),(H,), (H,O),(O,)

    N, XF = x.shape
    E, EF = edge_attr.shape
    H = w1a.shape[1]
    O = w1b.shape[1]

    # Pad rows to the f32 sublane minimum only; lane-dense pad only the final output.
    N_pad = _round_up(N, 8)
    E_pad = _round_up(E, 8)
    O_lanes = _round_up(O, 128)

    row = edge_index[0].astype(jnp.int32)
    col = edge_index[1].astype(jnp.int32)
    # Padded edges get index N_pad -> match nothing -> contribute nothing.
    row_p = jnp.full((E_pad, 1), N_pad, jnp.int32).at[:E, 0].set(row)
    colT_p = jnp.full((1, E_pad), N_pad, jnp.int32).at[0, :E].set(col)

    x_p = jnp.zeros((N_pad, XF), jnp.float32).at[:N].set(x)
    ea_p = jnp.zeros((E_pad, EF), jnp.float32).at[:E].set(edge_attr)

    # Split first-layer weights into row blocks (replaces the concatenations).
    w1x, w1e = w1a[:XF], w1a[XF:]
    w2x, w2g = w2a[:XF], w2a[XF:]
    # Lane-pad only the last layer's output columns -> unmasked vst on the result.
    w2b_p = jnp.zeros((H, O_lanes), jnp.float32).at[:, :O].set(w2b)
    b2b_p = jnp.zeros((1, O_lanes), jnp.float32).at[0, :O].set(b2b)

    out = pl.pallas_call(
        _node_model_kernel,
        out_shape=jax.ShapeDtypeStruct((N_pad, O_lanes), jnp.float32),
        in_specs=[pl.BlockSpec(memory_space=pltpu.MemorySpace.VMEM)] * 14,
        out_specs=pl.BlockSpec(memory_space=pltpu.MemorySpace.VMEM),
        compiler_params=pltpu.CompilerParams(vmem_limit_bytes=32 * 1024 * 1024),
    )(
        row_p, colT_p, x_p, ea_p,
        w1x, w1e, b1a.reshape(1, -1),
        w1b, b1b.reshape(1, -1),
        w2x, w2g, b2a.reshape(1, -1),
        w2b_p, b2b_p,
    )
    return out[:N, :O]


# ---------------- pure-JAX reference (PyTorch semantics, f32) ----------------

def node_model_ref(params, x, edge_index, edge_attr):
    (w1a, b1a), (w1b, b1b) = params["mlp1"]
    (w2a, b2a), (w2b, b2b) = params["mlp2"]
    row, col = edge_index[0], edge_index[1]
    N = x.shape[0]

    h = jnp.concatenate([x[row], edge_attr], axis=1)
    h = _leaky_relu(h @ w1a + b1a)
    msg = h @ w1b + b1b

    summed = jnp.zeros((N, msg.shape[1]), jnp.float32).at[col].add(msg)
    counts = jnp.zeros((N,), jnp.float32).at[col].add(1.0)
    agg = summed / jnp.maximum(counts, 1.0)[:, None]      # scatter_mean (0 for isolated nodes)

    h2 = jnp.concatenate([x, agg], axis=1)
    h2 = _leaky_relu(h2 @ w2a + b2a)
    return h2 @ w2b + b2b


# ---------------- deterministic PyTorch-Linear-style init ----------------

def _init_linear(key, fan_in, fan_out):
    kw, kb = jax.random.split(key)
    bound = 1.0 / jnp.sqrt(jnp.float32(fan_in))
    w = jax.random.uniform(kw, (fan_in, fan_out), jnp.float32, -bound, bound)
    b = jax.random.uniform(kb, (fan_out,), jnp.float32, -bound, bound)
    return w, b


def _init_mlp(key, in_size, out_size, n_hidden=1, hidden_size=16):
    # Fused kernel assumes n_hidden == 1 (Linear -> LeakyReLU -> Linear), activate_last=False.
    keys = jax.random.split(key, n_hidden + 1)
    params, l_in = [], in_size
    for i in range(n_hidden):
        params.append(_init_linear(keys[i], l_in, hidden_size))
        l_in = hidden_size
    params.append(_init_linear(keys[-1], l_in, out_size))
    return params


def init_node_model(key, x_size, edge_feat, out_size, n_hidden=1, hidden_size=16):
    in_size = x_size + edge_feat                    # node_mlp_1 input = cat([x[row], edge_attr])
    k1, k2 = jax.random.split(key)
    return dict(
        mlp1=_init_mlp(k1, in_size, out_size, n_hidden, hidden_size),
        mlp2=_init_mlp(k2, x_size + out_size, out_size, n_hidden, hidden_size),
    )


if __name__ == "__main__":
    key = jax.random.PRNGKey(0)
    k_p, k_x, k_e, k_ei = jax.random.split(key, 4)

    N_NODES, N_EDGES = 16, 32
    X_SIZE, EDGE_FEAT, OUT_SIZE, HIDDEN = 4, 3, 4, 16

    params = init_node_model(k_p, X_SIZE, EDGE_FEAT, OUT_SIZE, n_hidden=1, hidden_size=HIDDEN)
    x = jax.random.normal(k_x, (N_NODES, X_SIZE), jnp.float32)
    edge_attr = jax.random.normal(k_e, (N_EDGES, EDGE_FEAT), jnp.float32)
    edge_index = jax.random.randint(k_ei, (2, N_EDGES), 0, N_NODES)

    fwd = jax.jit(node_model_pallas)
    out = jax.block_until_ready(fwd(params, x, edge_index, edge_attr))

    ref = node_model_ref(params, x, edge_index, edge_attr)
    assert out.shape == (N_NODES, OUT_SIZE), out.shape
    # Tolerance accounts for bf16 MXU operands (f32 accumulation) per the perf review.
    max_err = float(jnp.max(jnp.abs(out - ref)))
    assert jnp.allclose(out, ref, rtol=5e-2, atol=5e-2), max_err

    print("KERNEL_OK")
</pallas_src>

<mosaic_0001>
module attributes {stable_mosaic.version = 11 : i64} {
  func.func @_node_model_kernel(%arg0: memref<32x1xi32, #tpu.memory_space<vmem>>, %arg1: memref<1x32xi32, #tpu.memory_space<vmem>>, %arg2: memref<16x4xf32, #tpu.memory_space<vmem>>, %arg3: memref<32x3xf32, #tpu.memory_space<vmem>>, %arg4: memref<4x16xf32, #tpu.memory_space<vmem>>, %arg5: memref<3x16xf32, #tpu.memory_space<vmem>>, %arg6: memref<1x16xf32, #tpu.memory_space<vmem>>, %arg7: memref<16x4xf32, #tpu.memory_space<vmem>>, %arg8: memref<1x4xf32, #tpu.memory_space<vmem>>, %arg9: memref<4x16xf32, #tpu.memory_space<vmem>>, %arg10: memref<4x16xf32, #tpu.memory_space<vmem>>, %arg11: memref<1x16xf32, #tpu.memory_space<vmem>>, %arg12: memref<16x128xf32, #tpu.memory_space<vmem>>, %arg13: memref<1x128xf32, #tpu.memory_space<vmem>>, %arg14: memref<16x128xf32, #tpu.memory_space<vmem>>) attributes {dimension_semantics = [], scalar_prefetch = 0 : i64, scratch_operands = 0 : i64, tpu.core_type = #tpu.core_type<tc>} {
    %c0 = arith.constant 0 : index
    %c0_0 = arith.constant 0 : index
    %0 = vector.load %arg2[%c0, %c0_0] : memref<16x4xf32, #tpu.memory_space<vmem>>, vector<16x4xf32>
    %c0_1 = arith.constant 0 : index
    %c0_2 = arith.constant 0 : index
    %1 = vector.load %arg3[%c0_1, %c0_2] : memref<32x3xf32, #tpu.memory_space<vmem>>, vector<32x3xf32>
    %2 = tpu.iota {dimensions = array<i32: 1>} : vector<32x16xi32>
    %c0_3 = arith.constant 0 : index
    %c0_4 = arith.constant 0 : index
    %3 = vector.load %arg0[%c0_3, %c0_4] : memref<32x1xi32, #tpu.memory_space<vmem>>, vector<32x1xi32>
    %4 = vector.broadcast %3 : vector<32x1xi32> to vector<32x16xi32>
    %5 = arith.cmpi eq, %2, %4 : vector<32x16xi32>
    %6 = arith.extui %5 : vector<32x16xi1> to vector<32x16xi32>
    %7 = arith.sitofp %6 : vector<32x16xi32> to vector<32x16xf32>
    %cst = arith.constant dense<0.000000e+00> : vector<32x4xf32>
    %8 = tpu.matmul %7, %0, %cst {dimension_numbers = #tpu.dot_dimension_numbers<[1], [0], [0], [1], [0, 0, 1, 1], [], []>} : vector<32x16xf32>, vector<16x4xf32>, vector<32x4xf32> -> vector<32x4xf32>
    %9 = arith.truncf %8 : vector<32x4xf32> to vector<32x4xbf16>
    %c0_5 = arith.constant 0 : index
    %c0_6 = arith.constant 0 : index
    %10 = vector.load %arg4[%c0_5, %c0_6] : memref<4x16xf32, #tpu.memory_space<vmem>>, vector<4x16xf32>
    %11 = arith.truncf %10 : vector<4x16xf32> to vector<4x16xbf16>
    %cst_7 = arith.constant dense<0.000000e+00> : vector<32x16xf32>
    %12 = tpu.matmul %9, %11, %cst_7 {dimension_numbers = #tpu.dot_dimension_numbers<[1], [0], [0], [1], [0, 0, 1, 1], [], []>} : vector<32x4xbf16>, vector<4x16xbf16>, vector<32x16xf32> -> vector<32x16xf32>
    %13 = arith.truncf %1 : vector<32x3xf32> to vector<32x3xbf16>
    %c0_8 = arith.constant 0 : index
    %c0_9 = arith.constant 0 : index
    %14 = vector.load %arg5[%c0_8, %c0_9] : memref<3x16xf32, #tpu.memory_space<vmem>>, vector<3x16xf32>
    %15 = arith.truncf %14 : vector<3x16xf32> to vector<3x16xbf16>
    %cst_10 = arith.constant dense<0.000000e+00> : vector<32x16xf32>
    %16 = tpu.matmul %13, %15, %cst_10 {dimension_numbers = #tpu.dot_dimension_numbers<[1], [0], [0], [1], [0, 0, 1, 1], [], []>} : vector<32x3xbf16>, vector<3x16xbf16>, vector<32x16xf32> -> vector<32x16xf32>
    %17 = arith.addf %12, %16 : vector<32x16xf32>
    %c0_11 = arith.constant 0 : index
    %c0_12 = arith.constant 0 : index
    %18 = vector.load %arg6[%c0_11, %c0_12] : memref<1x16xf32, #tpu.memory_space<vmem>>, vector<1x16xf32>
    %19 = vector.broadcast %18 : vector<1x16xf32> to vector<32x16xf32>
    %20 = arith.addf %17, %19 : vector<32x16xf32>
    %cst_13 = arith.constant 0.000000e+00 : f32
    %21 = vector.broadcast %cst_13 : f32 to vector<32x16xf32>
    %22 = arith.cmpf ogt, %20, %21 : vector<32x16xf32>
    %cst_14 = arith.constant 0.00999999977 : f32
    %23 = vector.broadcast %cst_14 : f32 to vector<32x16xf32>
    %24 = arith.mulf %23, %20 : vector<32x16xf32>
    %25 = arith.select %22, %20, %24 : vector<32x16xi1>, vector<32x16xf32>
    %26 = arith.truncf %25 : vector<32x16xf32> to vector<32x16xbf16>
    %c0_15 = arith.constant 0 : index
    %c0_16 = arith.constant 0 : index
    %27 = vector.load %arg7[%c0_15, %c0_16] : memref<16x4xf32, #tpu.memory_space<vmem>>, vector<16x4xf32>
    %28 = arith.truncf %27 : vector<16x4xf32> to vector<16x4xbf16>
    %cst_17 = arith.constant dense<0.000000e+00> : vector<32x4xf32>
    %29 = tpu.matmul %26, %28, %cst_17 {dimension_numbers = #tpu.dot_dimension_numbers<[1], [0], [0], [1], [0, 0, 1, 1], [], []>} : vector<32x16xbf16>, vector<16x4xbf16>, vector<32x4xf32> -> vector<32x4xf32>
    %c0_18 = arith.constant 0 : index
    %c0_19 = arith.constant 0 : index
    %30 = vector.load %arg8[%c0_18, %c0_19] : memref<1x4xf32, #tpu.memory_space<vmem>>, vector<1x4xf32>
    %31 = vector.broadcast %30 : vector<1x4xf32> to vector<32x4xf32>
    %32 = arith.addf %29, %31 : vector<32x4xf32>
    %33 = tpu.iota {dimensions = array<i32: 0>} : vector<16x32xi32>
    %c0_20 = arith.constant 0 : index
    %c0_21 = arith.constant 0 : index
    %34 = vector.load %arg1[%c0_20, %c0_21] : memref<1x32xi32, #tpu.memory_space<vmem>>, vector<1x32xi32>
    %35 = vector.broadcast %34 : vector<1x32xi32> to vector<16x32xi32>
    %36 = arith.cmpi eq, %33, %35 : vector<16x32xi32>
    %37 = arith.extui %36 : vector<16x32xi1> to vector<16x32xi32>
    %38 = arith.sitofp %37 : vector<16x32xi32> to vector<16x32xf32>
    %cst_22 = arith.constant dense<0.000000e+00> : vector<16x4xf32>
    %39 = tpu.matmul %38, %32, %cst_22 {dimension_numbers = #tpu.dot_dimension_numbers<[1], [0], [0], [1], [0, 0, 1, 1], [], []>} : vector<16x32xf32>, vector<32x4xf32>, vector<16x4xf32> -> vector<16x4xf32>
    %cst_23 = arith.constant dense<0.000000e+00> : vector<16xf32>
    %40 = vector.multi_reduction <add>, %38, %cst_23 [1] : vector<16x32xf32> to vector<16xf32>
    %41 = vector.shape_cast %40 : vector<16xf32> to vector<16x1xf32>
    %cst_24 = arith.constant 1.000000e+00 : f32
    %42 = vector.broadcast %cst_24 : f32 to vector<16x1xf32>
    %43 = arith.maximumf %41, %42 : vector<16x1xf32>
    %44 = tpu.reciprocal %43 {approx = true} : vector<16x1xf32> -> vector<16x1xf32>
    %45 = vector.broadcast %44 : vector<16x1xf32> to vector<16x4xf32>
    %46 = arith.mulf %39, %45 : vector<16x4xf32>
    %47 = arith.truncf %0 : vector<16x4xf32> to vector<16x4xbf16>
    %c0_25 = arith.constant 0 : index
    %c0_26 = arith.constant 0 : index
    %48 = vector.load %arg9[%c0_25, %c0_26] : memref<4x16xf32, #tpu.memory_space<vmem>>, vector<4x16xf32>
    %49 = arith.truncf %48 : vector<4x16xf32> to vector<4x16xbf16>
    %cst_27 = arith.constant dense<0.000000e+00> : vector<16x16xf32>
    %50 = tpu.matmul %47, %49, %cst_27 {dimension_numbers = #tpu.dot_dimension_numbers<[1], [0], [0], [1], [0, 0, 1, 1], [], []>} : vector<16x4xbf16>, vector<4x16xbf16>, vector<16x16xf32> -> vector<16x16xf32>
    %51 = arith.truncf %46 : vector<16x4xf32> to vector<16x4xbf16>
    %c0_28 = arith.constant 0 : index
    %c0_29 = arith.constant 0 : index
    %52 = vector.load %arg10[%c0_28, %c0_29] : memref<4x16xf32, #tpu.memory_space<vmem>>, vector<4x16xf32>
    %53 = arith.truncf %52 : vector<4x16xf32> to vector<4x16xbf16>
    %cst_30 = arith.constant dense<0.000000e+00> : vector<16x16xf32>
    %54 = tpu.matmul %51, %53, %cst_30 {dimension_numbers = #tpu.dot_dimension_numbers<[1], [0], [0], [1], [0, 0, 1, 1], [], []>} : vector<16x4xbf16>, vector<4x16xbf16>, vector<16x16xf32> -> vector<16x16xf32>
    %55 = arith.addf %50, %54 : vector<16x16xf32>
    %c0_31 = arith.constant 0 : index
    %c0_32 = arith.constant 0 : index
    %56 = vector.load %arg11[%c0_31, %c0_32] : memref<1x16xf32, #tpu.memory_space<vmem>>, vector<1x16xf32>
    %57 = vector.broadcast %56 : vector<1x16xf32> to vector<16x16xf32>
    %58 = arith.addf %55, %57 : vector<16x16xf32>
    %cst_33 = arith.constant 0.000000e+00 : f32
    %59 = vector.broadcast %cst_33 : f32 to vector<16x16xf32>
    %60 = arith.cmpf ogt, %58, %59 : vector<16x16xf32>
    %cst_34 = arith.constant 0.00999999977 : f32
    %61 = vector.broadcast %cst_34 : f32 to vector<16x16xf32>
    %62 = arith.mulf %61, %58 : vector<16x16xf32>
    %63 = arith.select %60, %58, %62 : vector<16x16xi1>, vector<16x16xf32>
    %64 = arith.truncf %63 : vector<16x16xf32> to vector<16x16xbf16>
    %c0_35 = arith.constant 0 : index
    %c0_36 = arith.constant 0 : index
    %65 = vector.load %arg12[%c0_35, %c0_36] : memref<16x128xf32, #tpu.memory_space<vmem>>, vector<16x128xf32>
    %66 = arith.truncf %65 : vector<16x128xf32> to vector<16x128xbf16>
    %cst_37 = arith.constant dense<0.000000e+00> : vector<16x128xf32>
    %67 = tpu.matmul %64, %66, %cst_37 {dimension_numbers = #tpu.dot_dimension_numbers<[1], [0], [0], [1], [0, 0, 1, 1], [], []>} : vector<16x16xbf16>, vector<16x128xbf16>, vector<16x128xf32> -> vector<16x128xf32>
    %c0_38 = arith.constant 0 : index
    %c0_39 = arith.constant 0 : index
    %68 = vector.load %arg13[%c0_38, %c0_39] : memref<1x128xf32, #tpu.memory_space<vmem>>, vector<1x128xf32>
    %69 = vector.broadcast %68 : vector<1x128xf32> to vector<16x128xf32>
    %70 = arith.addf %67, %69 : vector<16x128xf32>
    %c0_40 = arith.constant 0 : index
    %c0_41 = arith.constant 0 : index
    %71 = vector.load %arg14[%c0_40, %c0_41] : memref<16x128xf32, #tpu.memory_space<vmem>>, vector<16x128xf32>
    tpu.vector_store %arg14[%c0_40, %c0_41], %70 {strides = array<i32>} : memref<16x128xf32, #tpu.memory_space<vmem>>, vector<16x128xf32>,
    return
  }
}

</mosaic_0001>

<bundles_post_ra>
// kernel: node_model_pallas.1
= control target key start
LH: loop header
LB: loop body
LE: loop exit
PB: predicated region body
PF: predicated region fallthrough
CT: control target
= control target key end

     0   :  { %v823_v0 = vmov 0   ;;  %vm197_vm0 = vcmask 1040384   ;;  %vm198_vm1 = vcmask 1041408   ;;  %v824_v9 = vmov 65535   ;;  %s1017_s0 = inlined_call_operand.vmem [shape: s32[32,1], index: 0, kind: input, shape index: {}]   ;;  %s1018_s2 = inlined_call_operand.vmem [shape: f32[16,4], index: 2, kind: input, shape index: {}]   ;;  %s1019_s5 = inlined_call_operand.vmem [shape: f32[3,16], index: 5, kind: input, shape index: {}]   ;;  %s1020_s3 = inlined_call_operand.vmem [shape: f32[32,3], index: 3, kind: input, shape index: {}]   ;;  %s1021_s4 = inlined_call_operand.vmem [shape: f32[4,16], index: 4, kind: input, shape index: {}]   ;;  %s1022_s7 = inlined_call_operand.vmem [shape: f32[16,4], index: 7, kind: input, shape index: {}]   ;;  %s1023_s6 = inlined_call_operand.vmem [shape: f32[1,16], index: 6, kind: input, shape index: {}]   ;;  %s1024_s1 = inlined_call_operand.vmem [shape: s32[1,32], index: 1, kind: input, shape index: {}]   ;;  %s1025_s10 = inlined_call_operand.vmem [shape: f32[4,16], index: 10, kind: input, shape index: {}]   ;;  %s1026_s8 = inlined_call_operand.vmem [shape: f32[1,4], index: 8, kind: input, shape index: {}]   ;;  %s1027_s9 = inlined_call_operand.vmem [shape: f32[4,16], index: 9, kind: input, shape index: {}]   ;;  %s1028_s12 = inlined_call_operand.vmem [shape: f32[16,128], index: 12, kind: input, shape index: {}]   ;;  %s1029_s11 = inlined_call_operand.vmem [shape: f32[1,16], index: 11, kind: input, shape index: {}]   ;;  %s1030_s13 = inlined_call_operand.vmem [shape: f32[1,128], index: 13, kind: input, shape index: {}]   ;;  %s1031_s14 = inlined_call_operand.vmem [shape: f32[16,128], index: 14, kind: output, shape index: {}]  }
   0x1   :  { %818 = vset.pattern.permute.xlu1 %v823_v0  ;;  %817 = vset.pattern.permute.xlu0 %v823_v0  ;;  %v58_v1 = vld [vmem:[%s1017_s0 + $0x10] sm:$0xff]  ;;  %v56_v2 = vld [vmem:[%s1017_s0] sm:$0xff]  ;;  %v49_v4 = vld [vmem:[%s1018_s2 + $0x8] sm:$0xff]  ;;  %v199_v10 = vsel %vm197_vm0, 4294967295, %v824_v9  ;;  %vm190_vm2 = vcmask 23552   ;;  %v825_v23 = vmov 0.0   ;;  %v54_v24 = vlaneseq }
   0x2   :  { %67 = vperm.xlu1 %818, %v58_v1   ;;  %61 = vperm.xlu0 %817, %v56_v2   ;;  %v48_v3 = vld [vmem:[%s1018_s2] sm:$0xff]  ;;  %v59_v5 = vld [vmem:[%s1017_s0 + $0x18] sm:$0xff]  ;;  %v57_v6 = vld [vmem:[%s1017_s0 + $0x8] sm:$0xff]  ;;  %v200_v14 = vsel %vm198_vm1, %v199_v10, 0  ;;  %vm84_vm3 = vcmask 130048   ;;  %vm253_vm8 = vcmask 31744  }
   0x3   :  { %v920_v7 = vpack.c.bf16 %v49_v4, %v48_v3  ;;  %v188_v8 = vld [vmem:[%s1019_s5] sm:$0x7]  ;;  %v51_v12 = vld [vmem:[%s1020_s3 + $0x8] sm:$0xff]  ;;  %v52_v17 = vld [vmem:[%s1020_s3 + $0x10] sm:$0xff]  ;;  %v55_v25 = vand.u32 127, %v54_v24  ;;  %v403_v62 = vshrl.u32 %v54_v24, 7 }
   0x4   :  { %v50_v11 = vld [vmem:[%s1020_s3] sm:$0xff]  ;;  %v189_v13 = vpack.c.bf16 %v188_v8, %v188_v8  ;;  %v53_v18 = vld [vmem:[%s1020_s3 + $0x18] sm:$0xff]  ;;  %v338_v41 = vld [vmem:[%s1022_s7 + $0x8] sm:$0xff]  ;;  %vm416_vm14 = vcmask 261120   ;;  %vm826_vm0 = vmmov 0  }
   0x5   :  { %797 = vmatprep.subr.bf16.mxu0 %v920_v7  ;;  %v186_v15 = vpack.c.bf16 %v51_v12, %v50_v11  ;;  %v184_v16 = vld [vmem:[%s1021_s4] sm:$0xf]  ;;  %v187_v21 = vpack.c.bf16 %v53_v18, %v52_v17  ;;  %v404_v63 = vadd.s32 8, %v403_v62 }
   0x6   :  { %70 = vperm.xlu1 %818, %v59_v5   ;;  %64 = vperm.xlu0 %817, %v57_v6   ;;  %v202_v19 = vand.u32 %v200_v14, %v189_v13  ;;  %v185_v20 = vpack.c.bf16 %v184_v16, %v184_v16  ;;  %v337_v40 = vld [vmem:[%s1022_s7] sm:$0xff] }
   0x7   :  { %799 = vmatpush3.bf16.msra.mxu0 %v920_v7  ;;  %751 = vmatprep.mubr.msk.bf16.mxu1 %vm190_vm2, %v186_v15  ;;  %v339_v42 = vpack.c.bf16 %v338_v41, %v337_v40  ;;  %v698_v43 = vld [vmem:[%s1023_s6] ss:$0 sm:$0xff] }
   0x8   :  { %749 = vmatprep.subr.bf16.mxu1 %v202_v19  ;;  %v261_v22 = vsel %vm198_vm1, %v185_v20, 0  ;;  %v702_v0 = vld [vmem:[%s1024_s1] ss:$0 sm:$0xff] }
   0x9   :  { %750 = vmatpush3.bf16.msra.mxu1 %v202_v19  ;;  %761 = vmatprep.subr.bf16.mxu0 %v339_v42  ;;  %vm410_vm13 = vcmp.eq.s32.totalorder %v403_v62, %v702_v0  ;;  %vm411_vm15 = vcmp.eq.s32.totalorder %v404_v63, %v702_v0  ;;  %v514_v5 = vld [vmem:[%s1025_s10] sm:$0xf] }
   0xa   :  { %812 = vmatprep.subr.msk.bf16.mxu1 %vm198_vm1, %v185_v20  ;;  %v703_v1 = vsel %vm410_vm13, 1.0, %v825_v23  ;;  %v704_v2 = vsel %vm411_vm15, 1.0, %v825_v23  ;;  %v515_v6 = vpack.c.bf16 %v514_v5, %v514_v5  ;;  %v699_v10 = vld [vmem:[%s1026_s8] ss:$0 sm:$0xff] }
   0xb   :  { %v501_v3 = vsel %vm416_vm14, %v704_v2, 0.0  ;;  %v498_v4 = vsel %vm416_vm14, %v703_v1, 0.0  ;;  %v511_v20 = vld [vmem:[%s1027_s9] sm:$0xf] }
   0xc   :  { %752 = vmatmul.mubr.msk.bf16.vlgmr.msra.gmra.mrb[0].mxu1 %vm190_vm2, %v187_v21  ;;  %v520_v8 = vsel %vm198_vm1, %v515_v6, 0  ;;  %v512_v21 = vpack.c.bf16 %v511_v20, %v511_v20 }
   0xd   :  { %756 = vmatpush3.bf16.msra.mxu1 %v261_v22 }
   0xe   :  { %778 = vmatprep.subr.bf16.mxu1 %v825_v23  ;;  %v567_v22 = vsel %vm198_vm1, %v512_v21, 0 }
  0x25   :  { %499 = vadd.xlane.f32.xlu0 %v498_v4 }
  0x2a   :  { %502 = vadd.xlane.f32.xlu1 %v501_v3 }
  0x81   :  { %v68_v26 = vpop.permute.xlu1 %67  ;;  %v62_v27 = vpop.permute.xlu0 %61 }
  0x82   :  { %vm72_vm4 = vcmp.eq.s32.totalorder %v55_v25, %v62_v27  ;;  %vm74_vm5 = vcmp.eq.s32.totalorder %v55_v25, %v68_v26 }
  0x83   :  { %v686_v28 = vsel %vm72_vm4, 1.0, %v825_v23  ;;  %v688_v31 = vsel %vm74_vm5, 1.0, %v825_v23 }
  0x84   :  { %743 = vmatprep.mubr.msk.f32.mxu0 %vm84_vm3, %v686_v28 }
  0x85   :  { %v71_v29 = vpop.permute.xlu1 %70  ;;  %v65_v30 = vpop.permute.xlu0 %64 }
  0x86   :  { %vm73_vm6 = vcmp.eq.s32.totalorder %v55_v25, %v65_v30  ;;  %vm75_vm7 = vcmp.eq.s32.totalorder %v55_v25, %v71_v29 }
  0x87   :  { %v687_v32 = vsel %vm73_vm6, 1.0, %v825_v23  ;;  %v689_v33 = vsel %vm75_vm7, 1.0, %v825_v23 }
  0x88   :  { %744 = vmatmul.mubr.msk.f32.vlgmr.msra.gmra.mrb[0].mxu0 %vm84_vm3, %v687_v32 }
  0x89   :  { %746 = vmatprep.mubr.msk.f32.mxu0 %vm84_vm3, %v688_v31  ;;  %762 = vmatpush3.bf16.msra.mxu0 %v339_v42  ;;  %v709_v42 = vld [vmem:[%s1029_s11] ss:$0 sm:$0xff] }
  0x8c   :  { %747 = vmatmul.mubr.msk.f32.gmra.mrb[2].mxu0 %vm84_vm3, %v689_v33 }
  0xb2   :  { %v500_v25 = vpop.xlane.xlu0 %499 }
  0xb3   :  { %v504_v27 = vmax.f32 %v500_v25, 1.0 }
  0xb7   :  { %v503_v24 = vpop.xlane.xlu1 %502 }
  0xb8   :  { %v505_v26 = vmax.f32 %v503_v24, 1.0 }
  0xba   :  { %819 = vrcp.f32 %v505_v26 }
  0xbb   :  { %821 = vrcp.f32 %v504_v27 }
  0xc4   :  { %v820_v28 = vpop.eup %819 }
  0xc5   :  { %v822_v29 = vpop.eup %821 }
 0x15b   :  { %v745_v34 = vpop.f32.mrb[0].mxu0 }
 0x15c   :  { %v163_v35 = vpop.f32.mrb[1].mxu0 }
 0x15d   :  { %v182_v36 = vpack.c.bf16 %v745_v34, %v163_v35 }
 0x15f   :  { %v748_v37 = vpop.f32.mrb[2].mxu0  ;;  %757 = vmatprep.mubr.msk.bf16.mxu1 %vm253_vm8, %v182_v36 }
 0x160   :  { %v173_v38 = vpop.f32.mrb[3].mxu0 }
 0x161   :  { %v183_v39 = vpack.c.bf16 %v748_v37, %v173_v38  ;;  %v626_v38 = vld [vmem:[%s1028_s12] sm:$0xff] }
 0x163   :  { %758 = vmatmul.mubr.msk.bf16.vlgmr.msra.gmra.mrb[0].mxu1 %vm253_vm8, %v183_v39  ;;  %v627_v39 = vld [vmem:[%s1028_s12 + $0x8] sm:$0xff] }
 0x164   :  { %779 = vmatpush3.bf16.msra.mxu1 %v520_v8  ;;  %780 = vmatprep.mubr.msk.bf16.mxu1 %vm826_vm0, %v825_v23  ;;  %v628_v40 = vpack.c.bf16 %v627_v39, %v626_v38 }
 0x165   :  { %790 = vmatprep.subr.bf16.mxu1 %v825_v23 }
 0x236   :  { %v759_v44 = vpop.f32.mrb[0].mxu1 }
 0x237   :  { %v321_v45 = vadd.f32 %v759_v44, %v698_v43  ;;  %v297_v46 = vpop.f32.mrb[1].mxu1 }
 0x238   :  { %v319_v47 = vadd.f32 %v698_v43, %v297_v46  ;;  %v760_v48 = vpop.f32.mrb[2].mxu1 }
 0x239   :  { %v329_v49 = vmul.f32 0.01, %v321_v45  ;;  %v322_v50 = vadd.f32 %v760_v48, %v698_v43  ;;  %v300_v51 = vpop.f32.mrb[3].mxu1  ;;  %vm325_vm9 = vcmp.gt.f32.partialorder %v321_v45, 0.0 }
 0x23a   :  { %v327_v52 = vmul.f32 0.01, %v319_v47  ;;  %v320_v53 = vadd.f32 %v698_v43, %v300_v51  ;;  %vm323_vm10 = vcmp.gt.f32.partialorder %v319_v47, 0.0 }
 0x23b   :  { %vm326_vm11 = vcmp.gt.f32.partialorder %v322_v50, 0.0  ;;  %v330_v54 = vmul.f32 0.01, %v322_v50  ;;  %v333_v56 = vsel %vm325_vm9, %v321_v45, %v329_v49 }
 0x23c   :  { %vm324_vm12 = vcmp.gt.f32.partialorder %v320_v53, 0.0  ;;  %v328_v55 = vmul.f32 0.01, %v320_v53  ;;  %v331_v58 = vsel %vm323_vm10, %v319_v47, %v327_v52 }
 0x23d   :  { %v334_v57 = vsel %vm326_vm11, %v322_v50, %v330_v54  ;;  %v710_v54 = vld [vmem:[%s1030_s13] ss:$0 sm:$0xff] }
 0x23e   :  { %v336_v59 = vpack.c.bf16 %v334_v57, %v333_v56  ;;  %v332_v60 = vsel %vm324_vm12, %v320_v53, %v328_v55 }
 0x23f   :  { %v335_v61 = vpack.c.bf16 %v332_v60, %v331_v58 }
 0x241   :  { %763 = vmatprep.mubr.msk.bf16.mxu0 %vm84_vm3, %v335_v61 }
 0x242   :  { %764 = vmatmul.mubr.msk.bf16.vlgmr.msra.gmra.mrb[4].mxu0 %vm84_vm3, %v336_v59 }
 0x243   :  { %775 = vmatprep.mubr.msk.f32.mxu0 %vm416_vm14, %v703_v1 }
 0x315   :  { %v765_v9 = vpop.f32.mrb[4].mxu0 }
 0x316   :  { %v387_v11 = vpop.f32.mrb[5].mxu0  ;;  %v396_v13 = vadd.f32 %v765_v9, %v699_v10 }
 0x317   :  { %v766_v12 = vpop.f32.mrb[6].mxu0  ;;  %v388_v16 = vadd.f32 %v699_v10, %v387_v11 }
 0x318   :  { %v399_v14 = vadd.f32 %v766_v12, %v699_v10  ;;  %v390_v15 = vpop.f32.mrb[7].mxu0 }
 0x319   :  { %v391_v17 = vadd.f32 %v699_v10, %v390_v15 }
 0x31a   :  { %v804_v18 = vpack.c.bf16 %v399_v14, %v396_v13 }
 0x31b   :  { %v800_v19 = vpack.c.bf16 %v391_v17, %v388_v16 }
 0x31d   :  { %801 = vmatprep.subr.bf16.mxu0 %v800_v19 }
 0x31e   :  { %803 = vmatpush3.bf16.msra.mxu0 %v800_v19 }
 0x31f   :  { %805 = vmatprep.subr.bf16.mxu0 %v804_v18 }
 0x322   :  { %807 = vmatpush3.bf16.msra.mxu0 %v804_v18 }
 0x323   :  { %784 = vmatprep.subr.bf16.mxu0 %v825_v23 }
 0x325   :  { %776 = vmatmul.mubr.msk.f32.vlgmr.msra.gmra.mrb[8].mxu0 %vm416_vm14, %v704_v2 }
 0x326   :  { %785 = vmatpush3.bf16.msra.mxu0 %v567_v22  ;;  %786 = vmatprep.mubr.msk.bf16.mxu0 %vm826_vm0, %v825_v23 }
 0x329   :  { %787 = vmatmul.mubr.msk.bf16.vlgmr.msra.gmra.mrb[12].mxu0 %vm253_vm8, %v920_v7 }
 0x3f8   :  { %v777_v30 = vpop.f32.mrb[8].mxu0 }
 0x3f9   :  { %v509_v31 = vmul.f32 %v820_v28, %v777_v30  ;;  %v489_v32 = vpop.f32.mrb[9].mxu0 }
 0x3fa   :  { %v508_v33 = vmul.f32 %v822_v29, %v489_v32 }
 0x3fc   :  { %v513_v34 = vpack.c.bf16 %v509_v31, %v508_v33  ;;  %v603_v35 = vpop.f32.mrb[12].mxu0 }
 0x3fd   :  { %v788_v7 = vpop.f32.mrb[13].mxu0 }
 0x3fe   :  { %781 = vmatmul.mubr.msk.bf16.vlgmr.msra.gmra.mrb[4].mxu1 %vm253_vm8, %v513_v34  ;;  %v606_v36 = vpop.f32.mrb[14].mxu0 }
 0x3ff   :  { %792 = vmatprep.mubr.msk.bf16.mxu1 %vm826_vm0, %v825_v23  ;;  %v789_v37 = vpop.f32.mrb[15].mxu0  ;;  %791 = vmatpush3.bf16.msra.mxu1 %v628_v40 }
 0x4d1   :  { %v556_v41 = vpop.f32.mrb[4].mxu1 }
 0x4d2   :  { %v604_v23 = vadd.f32 %v603_v35, %v556_v41  ;;  %v782_v43 = vpop.f32.mrb[5].mxu1 }
 0x4d3   :  { %v559_v44 = vpop.f32.mrb[6].mxu1 }
 0x4d4   :  { %v617_v45 = vadd.f32 %v709_v42, %v604_v23  ;;  %v607_v46 = vadd.f32 %v606_v36, %v559_v44  ;;  %v783_v47 = vpop.f32.mrb[7].mxu1 }
 0x4d6   :  { %v621_v48 = vmul.f32 0.01, %v617_v45  ;;  %v618_v49 = vadd.f32 %v709_v42, %v607_v46  ;;  %vm619_vm1 = vcmp.gt.f32.partialorder %v617_v45, 0.0 }
 0x4d8   :  { %vm620_vm2 = vcmp.gt.f32.partialorder %v618_v49, 0.0  ;;  %v622_v50 = vmul.f32 0.01, %v618_v49  ;;  %v623_v51 = vsel %vm619_vm1, %v617_v45, %v621_v48 }
 0x4da   :  { %v624_v52 = vsel %vm620_vm2, %v618_v49, %v622_v50 }
 0x4db   :  { %v625_v53 = vpack.c.bf16 %v624_v52, %v623_v51 }
 0x4dd   :  { %793 = vmatmul.mubr.msk.bf16.vlgmr.msra.gmra.mrb[8].mxu1 %vm84_vm3, %v625_v53 }
 0x5b0   :  { %v673_v55 = vpop.f32.mrb[8].mxu1 }
 0x5b1   :  { %v674_v56 = vadd.f32 %v710_v54, %v673_v55  ;;  %v794_v57 = vpop.f32.mrb[9].mxu1 }
 0x5b2   :  { %v676_v58 = vpop.f32.mrb[10].mxu1 }
 0x5b3   :  { %680 = vst [vmem:[%s1031_s14] sm:$0xff] %v674_v56  ;;  %v677_v59 = vadd.f32 %v710_v54, %v676_v58  ;;  %v795_v60 = vpop.f32.mrb[11].mxu1 }
 0x5b5   :  { %681 = vst [vmem:[%s1031_s14 + $0x8] sm:$0xff] %v677_v59 }

</bundles_post_ra>
